<compile_context>
chip_gen: v7x
topology: tpu7x:2x2x1
jax: 0.10.0
libtpu: 0.0.40
codegen_flags: <defaults>
</compile_context>

<pallas_src>
import jax
import jax.numpy as jnp
from jax.experimental import pallas as pl
from jax.experimental.pallas import tpu as pltpu


def _round_up(x, m):
    return (x + m - 1) // m * m


# ----------------------------------------------------------------------------
# Pallas kernel: fused FC classifier forward for one batch tile.
#   out = relu(x @ W1 + b1) @ W2 + b2
# x arrives as f32 (single HBM read of the original data) and is cast to bf16
# in-kernel; W1/W2 are bf16; accumulation + bias + ReLU are f32.
# ----------------------------------------------------------------------------
def fc_classifier_kernel(x_ref, w1_ref, b1_ref, w2_ref, b2_ref, out_ref):
    x = x_ref[...].astype(jnp.bfloat16)                       # (TM, lsd)
    # Layer 1: MXU matmul with f32 accumulation; bias + ReLU on the VPU in f32.
    h = jnp.dot(x, w1_ref[...], preferred_element_type=jnp.float32)
    h = jnp.maximum(h + b1_ref[...], 0.0)                     # (TM, H) f32
    # Layer 2: cast activations to bf16 for the MXU, accumulate in f32.
    logits = jnp.dot(h.astype(w2_ref.dtype), w2_ref[...],
                     preferred_element_type=jnp.float32)      # (TM, C)
    out_ref[...] = (logits + b2_ref[...]).astype(out_ref.dtype)


# ----------------------------------------------------------------------------
# Wrapper: CPMNets.forward (FC classifier path).
# ----------------------------------------------------------------------------
def cpmnets_forward(data, params, *, block_rows=8192):
    w1, b1, w2, b2 = params
    B, lsd = data.shape
    H = w1.shape[1]
    C = w2.shape[1]

    # Resident weights: bf16 for the MXU; biases stay f32.
    w1_bf = w1.astype(jnp.bfloat16)
    w2_bf = w2.astype(jnp.bfloat16)
    b1_f = b1.reshape(1, H).astype(jnp.float32)
    b2_f = b2.reshape(1, C).astype(jnp.float32)

    # Batch tile: as large as block_rows, but capped near ceil(B/2) so the
    # grid has >=2 steps (v7x megacore sharding) whenever the batch allows it.
    half = _round_up(max(pl.cdiv(B, 2), 8), 8)
    TM = max(8, min(block_rows, half))
    grid = (pl.cdiv(B, TM),)

    flops = 2 * B * (lsd * H + H * C)
    bytes_accessed = (B * lsd * 4            # x read (f32)
                      + lsd * H * 2          # W1 (bf16)
                      + H * C * 2            # W2 (bf16)
                      + H * 4 + C * 4        # biases (f32)
                      + B * C * 4)           # logits write (f32)

    out = pl.pallas_call(
        fc_classifier_kernel,
        out_shape=jax.ShapeDtypeStruct((B, C), jnp.float32),
        grid_spec=pltpu.PrefetchScalarGridSpec(
            num_scalar_prefetch=0,
            grid=grid,
            in_specs=[
                pl.BlockSpec((TM, lsd), lambda i: (i, 0)),   # x tile (f32)
                pl.BlockSpec((lsd, H), lambda i: (0, 0)),    # W1 (resident)
                pl.BlockSpec((1, H), lambda i: (0, 0)),      # b1 (resident)
                pl.BlockSpec((H, C), lambda i: (0, 0)),      # W2 (resident)
                pl.BlockSpec((1, C), lambda i: (0, 0)),      # b2 (resident)
            ],
            out_specs=pl.BlockSpec((TM, C), lambda i: (i, 0)),
        ),
        compiler_params=pltpu.CompilerParams(
            dimension_semantics=("parallel",)),
        cost_estimate=pl.CostEstimate(flops=flops, transcendentals=0,
                                      bytes_accessed=bytes_accessed),
    )(data.astype(jnp.float32), w1_bf, b1_f, w2_bf, b2_f)

    return out


# ----------------------------------------------------------------------------
# Deterministic parameter initialization (mirrors torch.nn.Linear defaults:
# U(-1/sqrt(fan_in), 1/sqrt(fan_in))). Weights stored as (in, out).
# ----------------------------------------------------------------------------
def init_fc_classifier(key, lsd, class_num, hidden_unit=64, dtype=jnp.float32):
    k1, k2, k3, k4 = jax.random.split(key, 4)
    bound1 = 1.0 / (lsd ** 0.5)
    bound2 = 1.0 / (hidden_unit ** 0.5)
    w1 = jax.random.uniform(k1, (lsd, hidden_unit), dtype, -bound1, bound1)
    b1 = jax.random.uniform(k2, (1, hidden_unit), dtype, -bound1, bound1)
    w2 = jax.random.uniform(k3, (hidden_unit, class_num), dtype, -bound2, bound2)
    b2 = jax.random.uniform(k4, (1, class_num), dtype, -bound2, bound2)
    return (w1, b1, w2, b2)


def _reference_bf16(data, params):
    """Plain-JAX reference mimicking the kernel numerics (bf16 ops, f32 acc)."""
    w1, b1, w2, b2 = params
    xb = data.astype(jnp.bfloat16)
    h = jnp.dot(xb, w1.astype(jnp.bfloat16),
                preferred_element_type=jnp.float32) + b1.astype(jnp.float32)
    h = jnp.maximum(h, 0.0)
    out = jnp.dot(h.astype(jnp.bfloat16), w2.astype(jnp.bfloat16),
                  preferred_element_type=jnp.float32) + b2.astype(jnp.float32)
    return out


if __name__ == "__main__":
    # Small shapes consistent with the module: lsd=32, hidden=64, class_num=4.
    lsd, hidden, class_num = 32, 64, 4

    key = jax.random.PRNGKey(0)
    k_data, k_params, k_big = jax.random.split(key, 3)
    params = init_fc_classifier(k_params, lsd, class_num, hidden_unit=hidden)
    w1, b1, w2, b2 = params

    # --- Case 1: tiny batch (single tile, grid=(1,)). -----------------------
    batch = 8
    data = jax.random.normal(k_data, (batch, lsd), dtype=jnp.float32)
    logits = cpmnets_forward(data, params)
    jax.block_until_ready(logits)
    assert logits.shape == (batch, class_num)

    ref_bf16 = _reference_bf16(data, params)
    ref_f32 = jnp.maximum(data @ w1 + b1, 0.0) @ w2 + b2
    assert jnp.allclose(logits, ref_bf16, atol=2e-4, rtol=2e-4), "bf16-ref mismatch"
    assert jnp.allclose(logits, ref_f32, atol=5e-2, rtol=5e-2), "f32-ref mismatch"

    # --- Case 2: batch not a tile multiple (ragged last block + grid>1). ----
    batch2 = 600
    data2 = jax.random.normal(k_big, (batch2, lsd), dtype=jnp.float32)
    logits2 = cpmnets_forward(data2, params, block_rows=256)  # grid of 3 tiles
    jax.block_until_ready(logits2)
    assert logits2.shape == (batch2, class_num)
    ref2 = _reference_bf16(data2, params)
    assert jnp.allclose(logits2, ref2, atol=2e-4, rtol=2e-4), "gridded mismatch"
    assert bool(jnp.isfinite(logits2).all()), "non-finite values in output"

    # --- Case 3: default (large) tile path, grid capped at ceil(B/2). -------
    logits3 = cpmnets_forward(data2, params)                  # TM=304, grid=2
    jax.block_until_ready(logits3)
    assert jnp.allclose(logits3, ref2, atol=2e-4, rtol=2e-4), "default-tile mismatch"

    print("KERNEL_OK")
</pallas_src>

<mosaic_0001>
module attributes {stable_mosaic.version = 11 : i64} {
  func.func @fc_classifier_kernel(%arg0: i32, %arg1: memref<8x32xf32, #tpu.memory_space<vmem>>, %arg2: memref<32x64xbf16, #tpu.memory_space<vmem>>, %arg3: memref<1x64xf32, #tpu.memory_space<vmem>>, %arg4: memref<64x4xbf16, #tpu.memory_space<vmem>>, %arg5: memref<1x4xf32, #tpu.memory_space<vmem>>, %arg6: memref<8x4xf32, #tpu.memory_space<vmem>>) attributes {dimension_semantics = [#tpu.dimension_semantics<parallel>], iteration_bounds = array<i64: 1>, scalar_prefetch = 0 : i64, scratch_operands = 0 : i64, tpu.core_type = #tpu.core_type<tc>, window_params = [{transform_indices = @transform_0, window_bounds = array<i64: 8, 32>}, {pipeline_mode = #tpu.pipeline_mode<synchronous>, transform_indices = @transform_1, window_bounds = array<i64: 32, 64>}, {pipeline_mode = #tpu.pipeline_mode<synchronous>, transform_indices = @transform_2, window_bounds = array<i64: 1, 64>}, {pipeline_mode = #tpu.pipeline_mode<synchronous>, transform_indices = @transform_3, window_bounds = array<i64: 64, 4>}, {pipeline_mode = #tpu.pipeline_mode<synchronous>, transform_indices = @transform_4, window_bounds = array<i64: 1, 4>}, {transform_indices = @transform_5, window_bounds = array<i64: 8, 4>}]} {
    %c0 = arith.constant 0 : index
    %c0_0 = arith.constant 0 : index
    %0 = vector.load %arg1[%c0, %c0_0] : memref<8x32xf32, #tpu.memory_space<vmem>>, vector<8x32xf32>
    %1 = arith.truncf %0 : vector<8x32xf32> to vector<8x32xbf16>
    %c0_1 = arith.constant 0 : index
    %c0_2 = arith.constant 0 : index
    %2 = vector.load %arg2[%c0_1, %c0_2] : memref<32x64xbf16, #tpu.memory_space<vmem>>, vector<32x64xbf16>
    %cst = arith.constant dense<0.000000e+00> : vector<8x64xf32>
    %3 = tpu.matmul %1, %2, %cst {dimension_numbers = #tpu.dot_dimension_numbers<[1], [0], [0], [1], [0, 0, 1, 1], [], []>} : vector<8x32xbf16>, vector<32x64xbf16>, vector<8x64xf32> -> vector<8x64xf32>
    %c0_3 = arith.constant 0 : index
    %c0_4 = arith.constant 0 : index
    %4 = vector.load %arg3[%c0_3, %c0_4] : memref<1x64xf32, #tpu.memory_space<vmem>>, vector<1x64xf32>
    %5 = vector.broadcast %4 : vector<1x64xf32> to vector<8x64xf32>
    %6 = arith.addf %3, %5 : vector<8x64xf32>
    %cst_5 = arith.constant 0.000000e+00 : f32
    %7 = vector.broadcast %cst_5 : f32 to vector<8x64xf32>
    %8 = arith.maximumf %6, %7 : vector<8x64xf32>
    %9 = arith.truncf %8 : vector<8x64xf32> to vector<8x64xbf16>
    %c0_6 = arith.constant 0 : index
    %c0_7 = arith.constant 0 : index
    %10 = vector.load %arg4[%c0_6, %c0_7] : memref<64x4xbf16, #tpu.memory_space<vmem>>, vector<64x4xbf16>
    %cst_8 = arith.constant dense<0.000000e+00> : vector<8x4xf32>
    %11 = tpu.matmul %9, %10, %cst_8 {dimension_numbers = #tpu.dot_dimension_numbers<[1], [0], [0], [1], [0, 0, 1, 1], [], []>} : vector<8x64xbf16>, vector<64x4xbf16>, vector<8x4xf32> -> vector<8x4xf32>
    %c0_9 = arith.constant 0 : index
    %c0_10 = arith.constant 0 : index
    %12 = vector.load %arg5[%c0_9, %c0_10] : memref<1x4xf32, #tpu.memory_space<vmem>>, vector<1x4xf32>
    %13 = vector.broadcast %12 : vector<1x4xf32> to vector<8x4xf32>
    %14 = arith.addf %11, %13 : vector<8x4xf32>
    %c0_11 = arith.constant 0 : index
    %c0_12 = arith.constant 0 : index
    %15 = vector.load %arg6[%c0_11, %c0_12] : memref<8x4xf32, #tpu.memory_space<vmem>>, vector<8x4xf32>
    tpu.vector_store %arg6[%c0_11, %c0_12], %14 {strides = array<i32>} : memref<8x4xf32, #tpu.memory_space<vmem>>, vector<8x4xf32>,
    return
  }
  func.func @transform_0(%arg0: i32) -> (i32, i32) {
    %c0_i32 = arith.constant 0 : i32
    %c0_i32_0 = arith.constant 0 : i32
    return %arg0, %c0_i32 : i32, i32
  }
  func.func @transform_1(%arg0: i32) -> (i32, i32) {
    %c0_i32 = arith.constant 0 : i32
    %c0_i32_0 = arith.constant 0 : i32
    %c0_i32_1 = arith.constant 0 : i32
    return %c0_i32, %c0_i32_0 : i32, i32
  }
  func.func @transform_2(%arg0: i32) -> (i32, i32) {
    %c0_i32 = arith.constant 0 : i32
    %c0_i32_0 = arith.constant 0 : i32
    %c0_i32_1 = arith.constant 0 : i32
    return %c0_i32, %c0_i32_0 : i32, i32
  }
  func.func @transform_3(%arg0: i32) -> (i32, i32) {
    %c0_i32 = arith.constant 0 : i32
    %c0_i32_0 = arith.constant 0 : i32
    %c0_i32_1 = arith.constant 0 : i32
    return %c0_i32, %c0_i32_0 : i32, i32
  }
  func.func @transform_4(%arg0: i32) -> (i32, i32) {
    %c0_i32 = arith.constant 0 : i32
    %c0_i32_0 = arith.constant 0 : i32
    %c0_i32_1 = arith.constant 0 : i32
    return %c0_i32, %c0_i32_0 : i32, i32
  }
  func.func @transform_5(%arg0: i32) -> (i32, i32) {
    %c0_i32 = arith.constant 0 : i32
    %c0_i32_0 = arith.constant 0 : i32
    return %arg0, %c0_i32 : i32, i32
  }
}

</mosaic_0001>

<bundles_post_ra>
// kernel: tpu_custom_call.1
= control target key start
LH: loop header
LB: loop body
LE: loop exit
PB: predicated region body
PF: predicated region fallthrough
CT: control target
= control target key end

     0   :  { %v227_v0 = vmov 0.0   ;;  %vm228_vm0 = vmmov 0   ;;  %vm46_vm1 = vcmask 261120   ;;  %vm131_vm2 = vcmask 523264   ;;  %s289_s1 = inlined_call_operand.vmem [shape: bf16[32,64], index: 1, kind: input, shape index: {}]   ;;  %s290_s0 = inlined_call_operand.vmem [shape: f32[8,32], index: 0, kind: input, shape index: {}]   ;;  %s291_s3 = inlined_call_operand.vmem [shape: bf16[64,4], index: 3, kind: input, shape index: {}]   ;;  %s292_s2 = inlined_call_operand.vmem [shape: f32[1,64], index: 2, kind: input, shape index: {}]   ;;  %s293_s4 = inlined_call_operand.vmem [shape: f32[1,4], index: 4, kind: input, shape index: {}]   ;;  %s294_s5 = inlined_call_operand.vmem [shape: f32[8,4], index: 5, kind: output, shape index: {}]  }
   0x1   :  { %199 = vmatprep.subr.bf16.mxu0 %v227_v0  ;;  %v221_v1 = vld [vmem:[%s289_s1] sm:$0xff]   ;;  %203 = vmatprep.mubr.msk.bf16.mxu0 %vm228_vm0, %v227_v0  ;;  %v222_v2 = vld [vmem:[%s289_s1 + $0x8] sm:$0xff]   ;;  %v225_v7 = vld [vmem:[%s291_s3 + $0x10] sm:$0xff]   ;;  %vm175_vm3 = vcmask 31744  }
   0x2   :  { %207 = vmatprep.subr.bf16.mxu1 %v227_v0  ;;  %215 = vmatprep.mubr.msk.bf16.mxu1 %vm228_vm0, %v227_v0  ;;  %v21_v3 = vld [vmem:[%s290_s0] sm:$0xff]  ;;  %v224_v5 = vld [vmem:[%s291_s3 + $0x8] sm:$0xff]   ;;  %v226_v8 = vld [vmem:[%s291_s3 + $0x18] sm:$0xff]  }
   0x3   :  { %200 = vmatpush3.bf16.msra.mxu0 %v221_v1  ;;  %v223_v4 = vld [vmem:[%s291_s3] sm:$0xff]   ;;  %v22_v6 = vpack.c.bf16 %v21_v3, %v21_v3 }
   0x4   :  { %201 = vmatprep.subr.bf16.mxu0 %v227_v0  ;;  %208 = vmatpush3.bf16.msra.mxu1 %v223_v4  ;;  %v181_v9 = vld [vmem:[%s292_s2] ss:$0 sm:$0xff] }
   0x5   :  { %209 = vmatprep.subr.bf16.mxu1 %v227_v0  ;;  %v185_v17 = vld [vmem:[%s293_s4] ss:$0 sm:$0xff] }
   0x7   :  { %202 = vmatpush3.bf16.msra.mxu0 %v222_v2 }
   0x8   :  { %210 = vmatpush3.bf16.msra.mxu1 %v224_v5 }
   0x9   :  { %211 = vmatprep.subr.bf16.mxu1 %v227_v0 }
   0xa   :  { %204 = vmatmul.mubr.msk.bf16.vlgmr.msra.gmra.mrb[0].mxu0 %vm46_vm1, %v22_v6 }
   0xc   :  { %212 = vmatpush3.bf16.msra.mxu1 %v225_v7 }
   0xd   :  { %213 = vmatprep.subr.bf16.mxu1 %v227_v0 }
  0x10   :  { %214 = vmatpush3.bf16.msra.mxu1 %v226_v8 }
  0xdd   :  { %v84_v10 = vpop.f32.mrb[0].mxu0 }
  0xde   :  { %v85_v11 = vadd.f32 %v181_v9, %v84_v10  ;;  %v205_v12 = vpop.f32.mrb[1].mxu0 }
  0xdf   :  { %v87_v13 = vpop.f32.mrb[2].mxu0 }
  0xe0   :  { %v90_v14 = vmax.f32 %v85_v11, 0.0  ;;  %v206_v15 = vpop.f32.mrb[3].mxu0 }
  0xe2   :  { %v91_v16 = vpack.c.bf16 %v90_v14, %v90_v14 }
  0xe4   :  { %216 = vmatmul.mubr.msk.bf16.vlgmr.msra.gmra.mrb[0].mxu1 %vm131_vm2, %v91_v16 }
 0x1b7   :  { %v169_v18 = vpop.f32.mrb[0].mxu1 }
 0x1b8   :  { %v170_v19 = vadd.f32 %v185_v17, %v169_v18  ;;  %v217_v20 = vpop.f32.mrb[1].mxu1 }
 0x1b9   :  { %v172_v21 = vpop.f32.mrb[2].mxu1 }
 0x1ba   :  { %176 = vst.msk [vmem:[%s294_s5] sm:$0xff] %vm175_vm3, %v170_v19  ;;  %v218_v22 = vpop.f32.mrb[3].mxu1 }

</bundles_post_ra>
